<compile_context>
chip_gen: v7x
topology: tpu7x:2x2x1
jax: 0.10.0
libtpu: 0.0.40
codegen_flags: <defaults>
</compile_context>

<pallas_src>
import functools
import numpy as np
import jax
import jax.numpy as jnp
from jax.experimental import pallas as pl
from jax.experimental.pallas import tpu as pltpu


def _round_up(x, m):
    return ((x + m - 1) // m) * m


# Tile candidates (largest one that divides the 128-rounded dim is chosen, so
# the grid has no ragged tiles and stores stay unmasked / lane-dense).
_K_TILE_CANDIDATES = (1792, 1536, 1280, 1024, 896, 768, 640, 512, 384, 256, 128)
_N_TILE_CANDIDATES = (1024, 896, 768, 640, 512, 384, 256, 128)


def _pick_tile(dim, candidates):
    d = _round_up(dim, 128)
    for c in candidates:
        if c <= d and d % c == 0:
            return c
    return 128


# --------------------------------------------------------------------------
# Pallas kernel: tiled Linear  y = act(x @ W + b)
#   grid = (M/tm, N/tn, K/tk), f32 accumulator in VMEM,
#   bias folded into the accumulator at k == 0, activation + store at last k.
# --------------------------------------------------------------------------
def _linear_kernel(x_ref, w_ref, b_ref, o_ref, acc_ref, *, apply_relu):
    k = pl.program_id(2)

    @pl.when(k == 0)
    def _init():
        acc_ref[...] = jnp.broadcast_to(
            b_ref[...].astype(jnp.float32), acc_ref.shape)

    acc_ref[...] += jnp.dot(x_ref[...], w_ref[...],
                            preferred_element_type=jnp.float32)

    @pl.when(k == pl.num_programs(2) - 1)
    def _finalize():
        y = acc_ref[...]
        if apply_relu:
            y = jnp.maximum(y, 0.0)
        o_ref[...] = y.astype(o_ref.dtype)


def linear_pallas(x, w, b, *, apply_relu=False, out_dtype=jnp.bfloat16,
                  tm_max=512):
    """y = act(x @ w + b), MXU-tiled, bf16 operands, f32 accumulation.

    `w`/`b` are expected to already be bf16/f32 and zero-padded to multiples of
    128 (see prepare_params); any remaining pads here are no-ops.  Tiles:
    tm <= 512 (whole ROI batch in one M tile so the weight streams once),
    tn <= 1024, tk the largest divisor of K among the candidates (1792 for
    K=25088, 1024 for K=4096).  Double-buffered working set ~15 MiB at those
    tiles -> safe under 48 MiB scoped VMEM on all generations incl. v7x.
    Output keeps padded N columns (callers slice with static widths).
    """
    M, K = x.shape
    Kw, Nw = w.shape
    assert Kw >= K, (Kw, K)

    tk = _pick_tile(Kw, _K_TILE_CANDIDATES)
    tn = _pick_tile(Nw, _N_TILE_CANDIDATES)
    tm = min(tm_max, _round_up(M, 16))       # bf16 sublane-friendly

    Kp = _round_up(Kw, tk)
    Np = _round_up(Nw, tn)
    Mp = _round_up(M, tm)

    x_p = x.astype(jnp.bfloat16)
    if (Mp - M) or (Kp - K):
        x_p = jnp.pad(x_p, ((0, Mp - M), (0, Kp - K)))
    w_p = w.astype(jnp.bfloat16)
    if (Kp - Kw) or (Np - Nw):
        w_p = jnp.pad(w_p, ((0, Kp - Kw), (0, Np - Nw)))
    b_p = b.reshape(1, -1).astype(jnp.float32)
    if Np - b_p.shape[1]:
        b_p = jnp.pad(b_p, ((0, 0), (0, Np - b_p.shape[1])))

    grid = (Mp // tm, Np // tn, Kp // tk)

    # TODO(synk): for v6e with very deep K, pipeline_mode=pl.Buffered(3) on the
    # x / w in_specs (+ larger vmem_limit) recovers the last ~10% of roofline.
    out = pl.pallas_call(
        functools.partial(_linear_kernel, apply_relu=apply_relu),
        out_shape=jax.ShapeDtypeStruct((Mp, Np), out_dtype),
        grid_spec=pltpu.PrefetchScalarGridSpec(
            num_scalar_prefetch=0,
            grid=grid,
            in_specs=[
                pl.BlockSpec((tm, tk), lambda i, j, k: (i, k)),
                pl.BlockSpec((tk, tn), lambda i, j, k: (k, j)),
                pl.BlockSpec((1, tn), lambda i, j, k: (0, j)),
            ],
            out_specs=pl.BlockSpec((tm, tn), lambda i, j, k: (i, j)),
            scratch_shapes=[pltpu.VMEM((tm, tn), jnp.float32)],
        ),
        compiler_params=pltpu.CompilerParams(
            dimension_semantics=("parallel", "parallel", "arbitrary"),
            vmem_limit_bytes=48 * 1024 * 1024,
        ),
    )(x_p, w_p, b_p)
    return out[:M]


def fused_heads(h2, w_heads, b_heads, n_class):
    """Fused [cls_loc | score] layer. Tiny (K=hidden, N padded to 128): left to
    XLA per perf review — a pallas_call's fixed cost would rival its work."""
    y = jnp.dot(h2.astype(jnp.bfloat16), w_heads,
                preferred_element_type=jnp.float32) + b_heads
    return y[:, : n_class * 4], y[:, n_class * 4: n_class * 5]


# --------------------------------------------------------------------------
# One-time parameter preparation (outside the jitted forward).
# --------------------------------------------------------------------------
def prepare_params(raw):
    """bf16 cast, [cls_loc | score] fusion, zero-pad all dims to multiples of
    128 (which equals the padded size for any tile the kernel will pick)."""
    def prep(w, b):
        K, N = w.shape
        Kp, Np = _round_up(K, 128), _round_up(N, 128)
        w_p = jnp.pad(w, ((0, Kp - K), (0, Np - N))).astype(jnp.bfloat16)
        b2 = b.reshape(1, -1)
        b_p = jnp.pad(b2, ((0, 0), (0, Np - b2.shape[1]))).astype(jnp.float32)
        return w_p, b_p

    w1, b1 = prep(raw["w1"], raw["b1"])
    w2, b2 = prep(raw["w2"], raw["b2"])
    wh = jnp.concatenate([raw["wl"], raw["ws"]], axis=1)
    bh = jnp.concatenate([raw["bl"].reshape(1, -1),
                          raw["bs"].reshape(1, -1)], axis=1)
    wh, bh = prep(wh, bh)
    return {"w1": w1, "b1": b1, "w2": w2, "b2": b2,
            "w_heads": wh, "b_heads": bh}


# --------------------------------------------------------------------------
# Plain-JAX glue: pyramid level assignment and a point-gather RoIAlign
# (only 4 * roi_size^2 bilinear corner samples per ROI are gathered).
# --------------------------------------------------------------------------
def pyramid_roi_level(rois):
    # rois are (y1, x1, y2, x2)
    roi_h = rois[:, 2] - rois[:, 0] + 1.0
    roi_w = rois[:, 3] - rois[:, 1] + 1.0
    lvl = jnp.log(jnp.sqrt(roi_h * roi_w) / 224.0) / np.log(2.0)
    lvl = jnp.round(lvl + 4.0)
    return jnp.clip(lvl, 2.0, 4.0).astype(jnp.int32)        # int mask (robust)


def pyramid_roi_pool(feature_maps, rois, roi_indices, roi_size, spatial_scales):
    """Per-ROI pyramid-level RoIAlign.

    feature_maps[i] must be pyramid level (2+i) with stride feat_stride[i]
    (P2, P3, P4).  All levels are flattened channel-last into one
    (sum_l B*H_l*W_l, C) table; each ROI gathers only its 4*roi_size^2
    bilinear corner points from its own level — no per-ROI feature-map copies.
    TODO(synk): exact semantics of the legacy CUDA RoIAlignFunction vary by
    fork; this uses its align-corners sampling grid (no sampling_ratio avg).
    TODO(synk): for production sizes this gather could move into a Pallas
    kernel with ROI boxes as scalar prefetch + manual per-ROI DMA (pl.ANY).
    """
    B, C = feature_maps[0].shape[:2]
    Hs, Ws, offsets, flat_feats = [], [], [], []
    off = 0
    for f in feature_maps:
        _, _, H, W = f.shape
        Hs.append(H)
        Ws.append(W)
        offsets.append(off)
        off += B * H * W
        flat_feats.append(jnp.transpose(f, (0, 2, 3, 1)).reshape(B * H * W, C))
    table = jnp.concatenate(flat_feats, axis=0)              # (T, C)

    N = rois.shape[0]
    rs = roi_size
    lvl_idx = pyramid_roi_level(rois) - 2                    # 0..2
    H_arr = jnp.array(Hs, jnp.int32)[lvl_idx]                # (N,)
    W_arr = jnp.array(Ws, jnp.int32)[lvl_idx]
    base = (jnp.array(offsets, jnp.int32)[lvl_idx]
            + roi_indices.astype(jnp.int32) * H_arr * W_arr)
    scale = jnp.array(spatial_scales, jnp.float32)[lvl_idx]

    y1 = rois[:, 0] * scale
    x1 = rois[:, 1] * scale
    y2 = rois[:, 2] * scale
    x2 = rois[:, 3] * scale

    denom = float(max(rs - 1, 1))
    g = jnp.arange(rs, dtype=jnp.float32) / denom
    ys = y1[:, None] + (y2 - y1)[:, None] * g[None, :]       # (N, rs) rows
    xs = x1[:, None] + (x2 - x1)[:, None] * g[None, :]       # (N, rs) cols
    ys = jnp.clip(ys, 0.0, H_arr.astype(jnp.float32)[:, None] - 1.0)
    xs = jnp.clip(xs, 0.0, W_arr.astype(jnp.float32)[:, None] - 1.0)

    y0 = jnp.floor(ys).astype(jnp.int32)
    x0 = jnp.floor(xs).astype(jnp.int32)
    y1i = jnp.minimum(y0 + 1, H_arr[:, None] - 1)
    x1i = jnp.minimum(x0 + 1, W_arr[:, None] - 1)
    ly = ys - y0.astype(jnp.float32)                         # (N, rs)
    lx = xs - x0.astype(jnp.float32)                         # (N, rs)

    def gather(yi, xi):
        idx = (base[:, None, None]
               + yi[:, :, None] * W_arr[:, None, None]
               + xi[:, None, :]).reshape(-1)                 # (N*rs*rs,)
        return jnp.take(table, idx, axis=0).reshape(N, rs, rs, C)

    v00 = gather(y0, x0)
    v01 = gather(y0, x1i)
    v10 = gather(y1i, x0)
    v11 = gather(y1i, x1i)

    wy = ly[:, :, None, None]
    wx = lx[:, None, :, None]
    pooled = (v00 * (1 - wy) * (1 - wx) + v01 * (1 - wy) * wx
              + v10 * wy * (1 - wx) + v11 * wy * wx)          # (N, rs, rs, C)
    pooled = jnp.transpose(pooled, (0, 3, 1, 2))              # (N, C, rs, rs)
    return pooled.reshape(N, -1)                              # pool.view(n,-1)


@functools.partial(jax.jit,
                   static_argnames=("roi_size", "feat_stride", "n_class"))
def vgg16_roi_head_forward(params, feature_maps, rois, roi_indices, *,
                           roi_size, feat_stride, n_class):
    rois = rois.astype(jnp.float32)
    spatial_scales = tuple(1.0 / s for s in feat_stride)
    pool = pyramid_roi_pool(feature_maps, rois, roi_indices,
                            roi_size, spatial_scales)
    h1 = linear_pallas(pool, params["w1"], params["b1"],
                       apply_relu=True, out_dtype=jnp.bfloat16)
    h2 = linear_pallas(h1, params["w2"], params["b2"],
                       apply_relu=True, out_dtype=jnp.bfloat16)
    return fused_heads(h2, params["w_heads"], params["b_heads"], n_class)


def fc_head_reference(pool, p, n_class):
    """Plain-JAX reference with the same bf16/f32 mixed precision and the same
    pre-padded/fused weights as the Pallas path."""
    def lin(x, w, b, relu):
        y = jnp.dot(x.astype(jnp.bfloat16), w,
                    preferred_element_type=jnp.float32) + b
        return jnp.maximum(y, 0.0) if relu else y
    h1 = lin(pool, p["w1"], p["b1"], True).astype(jnp.bfloat16)
    h2 = lin(h1, p["w2"], p["b2"], True).astype(jnp.bfloat16)
    y = lin(h2, p["w_heads"], p["b_heads"], False)
    return y[:, : n_class * 4], y[:, n_class * 4: n_class * 5]


if __name__ == "__main__":
    key = jax.random.PRNGKey(0)
    keys = jax.random.split(key, 8)

    # Small synthetic configuration (VGG classifier's 4096 hidden -> 128 here)
    n_class = 3
    roi_size = 4
    feat_stride = (4, 8, 16)          # pyramid levels 2, 3, 4
    C = 8
    hidden = 128
    img = 256
    batch = 2
    n_rois = 8

    feature_maps = [
        jax.random.normal(keys[i], (batch, C, img // s, img // s), jnp.float32)
        for i, s in enumerate(feat_stride)
    ]

    # ROIs are (y1, x1, y2, x2); sizes chosen to hit pyramid levels 2, 3 and 4.
    tl = jax.random.uniform(keys[3], (n_rois, 2), minval=0.0, maxval=40.0)
    sizes = jnp.array([[40., 48.], [60., 72.], [90., 96.], [120., 110.],
                       [150., 160.], [180., 170.], [200., 210.], [50., 64.]],
                      jnp.float32)
    rois = jnp.concatenate([tl, tl + sizes - 1.0], axis=1)
    roi_indices = jnp.array([0, 1, 0, 1, 0, 1, 0, 1], jnp.int32)

    pool_dim = C * roi_size * roi_size   # 128
    raw_params = {
        # classifier (stand-in for the pretrained VGG16 fc layers)
        "w1": jax.random.normal(keys[4], (pool_dim, hidden), jnp.float32) * 0.01,
        "b1": jnp.zeros((hidden,), jnp.float32),
        "w2": jax.random.normal(keys[5], (hidden, hidden), jnp.float32) * 0.01,
        "b2": jnp.zeros((hidden,), jnp.float32),
        # cls_loc / score: normal_init(mean=0, std=0.01), zero bias
        "wl": jax.random.normal(keys[6], (hidden, n_class * 4), jnp.float32) * 0.01,
        "bl": jnp.zeros((n_class * 4,), jnp.float32),
        "ws": jax.random.normal(keys[7], (hidden, n_class), jnp.float32) * 0.01,
        "bs": jnp.zeros((n_class,), jnp.float32),
    }

    # One-time weight prep (bf16, padded, heads fused) — outside the jit.
    params = prepare_params(raw_params)

    roi_cls_locs, roi_scores = vgg16_roi_head_forward(
        params, feature_maps, rois, roi_indices,
        roi_size=roi_size, feat_stride=feat_stride, n_class=n_class)
    jax.block_until_ready((roi_cls_locs, roi_scores))

    assert roi_cls_locs.shape == (n_rois, n_class * 4)
    assert roi_scores.shape == (n_rois, n_class)

    # Cross-check the Pallas FC head against a plain-JAX reference that uses
    # the same pooled features and the same bf16/f32 mixed precision.
    spatial_scales = tuple(1.0 / s for s in feat_stride)
    pool_ref = pyramid_roi_pool(feature_maps, rois.astype(jnp.float32),
                                roi_indices, roi_size, spatial_scales)
    loc_ref, score_ref = fc_head_reference(pool_ref, params, n_class)
    np.testing.assert_allclose(np.asarray(roi_cls_locs), np.asarray(loc_ref),
                               rtol=1e-2, atol=1e-4)
    np.testing.assert_allclose(np.asarray(roi_scores), np.asarray(score_ref),
                               rtol=1e-2, atol=1e-4)

    print("KERNEL_OK")
</pallas_src>

<mosaic_0001>
module attributes {stable_mosaic.version = 11 : i64} {
  func.func @_linear_kernel(%arg0: i32, %arg1: i32, %arg2: i32, %arg3: memref<16x128xbf16, #tpu.memory_space<vmem>>, %arg4: memref<128x128xbf16, #tpu.memory_space<vmem>>, %arg5: memref<1x128xf32, #tpu.memory_space<vmem>>, %arg6: memref<16x128xbf16, #tpu.memory_space<vmem>>, %arg7: memref<16x128xf32, #tpu.memory_space<vmem>>) attributes {dimension_semantics = [#tpu.dimension_semantics<parallel>, #tpu.dimension_semantics<parallel>, #tpu.dimension_semantics<arbitrary>], iteration_bounds = array<i64: 1, 1, 1>, scalar_prefetch = 0 : i64, scratch_operands = 1 : i64, tpu.core_type = #tpu.core_type<tc>, window_params = [{transform_indices = @transform_0, window_bounds = array<i64: 16, 128>}, {transform_indices = @transform_1, window_bounds = array<i64: 128, 128>}, {transform_indices = @transform_2, window_bounds = array<i64: 1, 128>}, {transform_indices = @transform_3, window_bounds = array<i64: 16, 128>}]} {
    %c0_i32 = arith.constant 0 : i32
    %0 = arith.cmpi eq, %arg2, %c0_i32 : i32
    %1 = arith.extui %0 : i1 to i32
    %c0_i32_0 = arith.constant 0 : i32
    %2 = arith.cmpi ne, %1, %c0_i32_0 : i32
    scf.if %2 {
      %c0_10 = arith.constant 0 : index
      %c0_11 = arith.constant 0 : index
      %12 = vector.load %arg5[%c0_10, %c0_11] : memref<1x128xf32, #tpu.memory_space<vmem>>, vector<1x128xf32>
      %13 = vector.shape_cast %12 : vector<1x128xf32> to vector<1x128xf32>
      %14 = vector.broadcast %13 : vector<1x128xf32> to vector<16x128xf32>
      %c0_12 = arith.constant 0 : index
      %c0_13 = arith.constant 0 : index
      %15 = vector.load %arg7[%c0_12, %c0_13] : memref<16x128xf32, #tpu.memory_space<vmem>>, vector<16x128xf32>
      tpu.vector_store %arg7[%c0_12, %c0_13], %14 {strides = array<i32>} : memref<16x128xf32, #tpu.memory_space<vmem>>, vector<16x128xf32>,
    } else {
    }
    %c0 = arith.constant 0 : index
    %c0_1 = arith.constant 0 : index
    %3 = vector.load %arg7[%c0, %c0_1] : memref<16x128xf32, #tpu.memory_space<vmem>>, vector<16x128xf32>
    %c0_2 = arith.constant 0 : index
    %c0_3 = arith.constant 0 : index
    %4 = vector.load %arg3[%c0_2, %c0_3] : memref<16x128xbf16, #tpu.memory_space<vmem>>, vector<16x128xbf16>
    %c0_4 = arith.constant 0 : index
    %c0_5 = arith.constant 0 : index
    %5 = vector.load %arg4[%c0_4, %c0_5] : memref<128x128xbf16, #tpu.memory_space<vmem>>, vector<128x128xbf16>
    %cst = arith.constant dense<0.000000e+00> : vector<16x128xf32>
    %6 = tpu.matmul %4, %5, %cst {dimension_numbers = #tpu.dot_dimension_numbers<[1], [0], [0], [1], [0, 0, 1, 1], [], []>} : vector<16x128xbf16>, vector<128x128xbf16>, vector<16x128xf32> -> vector<16x128xf32>
    %7 = arith.addf %3, %6 : vector<16x128xf32>
    %c0_6 = arith.constant 0 : index
    %c0_7 = arith.constant 0 : index
    %8 = vector.load %arg7[%c0_6, %c0_7] : memref<16x128xf32, #tpu.memory_space<vmem>>, vector<16x128xf32>
    tpu.vector_store %arg7[%c0_6, %c0_7], %7 {strides = array<i32>} : memref<16x128xf32, #tpu.memory_space<vmem>>, vector<16x128xf32>,
    %c0_i32_8 = arith.constant 0 : i32
    %9 = arith.cmpi eq, %arg2, %c0_i32_8 : i32
    %10 = arith.extui %9 : i1 to i32
    %c0_i32_9 = arith.constant 0 : i32
    %11 = arith.cmpi ne, %10, %c0_i32_9 : i32
    scf.if %11 {
      %c0_10 = arith.constant 0 : index
      %c0_11 = arith.constant 0 : index
      %12 = vector.load %arg7[%c0_10, %c0_11] : memref<16x128xf32, #tpu.memory_space<vmem>>, vector<16x128xf32>
      %cst_12 = arith.constant 0.000000e+00 : f32
      %13 = vector.broadcast %cst_12 : f32 to vector<16x128xf32>
      %14 = arith.maximumf %12, %13 : vector<16x128xf32>
      %15 = arith.truncf %14 : vector<16x128xf32> to vector<16x128xbf16>
      %c0_13 = arith.constant 0 : index
      %c0_14 = arith.constant 0 : index
      %16 = vector.load %arg6[%c0_13, %c0_14] : memref<16x128xbf16, #tpu.memory_space<vmem>>, vector<16x128xbf16>
      tpu.vector_store %arg6[%c0_13, %c0_14], %15 {strides = array<i32>} : memref<16x128xbf16, #tpu.memory_space<vmem>>, vector<16x128xbf16>,
    } else {
    }
    return
  }
  func.func @transform_0(%arg0: i32, %arg1: i32, %arg2: i32) -> (i32, i32) {
    %c0_i32 = arith.constant 0 : i32
    return %arg0, %arg2 : i32, i32
  }
  func.func @transform_1(%arg0: i32, %arg1: i32, %arg2: i32) -> (i32, i32) {
    %c0_i32 = arith.constant 0 : i32
    return %arg2, %arg1 : i32, i32
  }
  func.func @transform_2(%arg0: i32, %arg1: i32, %arg2: i32) -> (i32, i32) {
    %c0_i32 = arith.constant 0 : i32
    %c0_i32_0 = arith.constant 0 : i32
    return %c0_i32, %arg1 : i32, i32
  }
  func.func @transform_3(%arg0: i32, %arg1: i32, %arg2: i32) -> (i32, i32) {
    %c0_i32 = arith.constant 0 : i32
    return %arg0, %arg1 : i32, i32
  }
}

</mosaic_0001>

<bundles_post_ra>
// kernel: vgg16_roi_head_forward.2
= control target key start
LH: loop header
LB: loop body
LE: loop exit
PB: predicated region body
PF: predicated region fallthrough
CT: control target
= control target key end

     0   :  { %v227_v0 = vmov 0.0   ;;  %vm228_vm0 = vmmov 0   ;;  %s282_s1 = inlined_call_operand.vmem [shape: bf16[128,128], index: 1, kind: input, shape index: {}]   ;;  %s283_s0 = inlined_call_operand.vmem [shape: bf16[16,128], index: 0, kind: input, shape index: {}]   ;;  %s284_s2 = inlined_call_operand.vmem [shape: f32[1,128], index: 2, kind: input, shape index: {}]   ;;  %s285_s3 = inlined_call_operand.vmem [shape: bf16[16,128], index: 3, kind: output, shape index: {}]  }
   0x1   :  { %196 = vmatprep.subr.bf16.mxu0 %v227_v0  ;;  %v218_v1 = vld [vmem:[%s282_s1] sm:$0xff]   ;;  %212 = vmatprep.mubr.msk.bf16.mxu0 %vm228_vm0, %v227_v0  ;;  %v219_v2 = vld [vmem:[%s282_s1 + $0x8] sm:$0xff]   ;;  %v220_v3 = vld [vmem:[%s282_s1 + $0x10] sm:$0xff]  }
   0x2   :  { %197 = vmatpush3.bf16.msra.mxu0 %v218_v1  ;;  %v221_v4 = vld [vmem:[%s282_s1 + $0x18] sm:$0xff]   ;;  %v222_v5 = vld [vmem:[%s282_s1 + $0x20] sm:$0xff]   ;;  %v223_v6 = vld [vmem:[%s282_s1 + $0x28] sm:$0xff]  }
   0x3   :  { %198 = vmatprep.subr.bf16.mxu0 %v227_v0  ;;  %v224_v7 = vld [vmem:[%s282_s1 + $0x30] sm:$0xff]   ;;  %v225_v8 = vld [vmem:[%s282_s1 + $0x38] sm:$0xff]   ;;  %v226_v9 = vld [vmem:[%s283_s0] sm:$0xff]  }
   0x4   :  { %v168_v10 = vld [vmem:[%s284_s2] ss:$0 sm:$0xff] }
   0x6   :  { %199 = vmatpush3.bf16.msra.mxu0 %v219_v2 }
   0x7   :  { %200 = vmatprep.subr.bf16.mxu0 %v227_v0 }
   0xa   :  { %201 = vmatpush3.bf16.msra.mxu0 %v220_v3 }
   0xb   :  { %202 = vmatprep.subr.bf16.mxu0 %v227_v0 }
   0xe   :  { %203 = vmatpush3.bf16.msra.mxu0 %v221_v4 }
   0xf   :  { %204 = vmatprep.subr.bf16.mxu0 %v227_v0 }
  0x12   :  { %205 = vmatpush3.bf16.msra.mxu0 %v222_v5 }
  0x13   :  { %206 = vmatprep.subr.bf16.mxu0 %v227_v0 }
  0x16   :  { %207 = vmatpush3.bf16.msra.mxu0 %v223_v6 }
  0x17   :  { %208 = vmatprep.subr.bf16.mxu0 %v227_v0 }
  0x1a   :  { %209 = vmatpush3.bf16.msra.mxu0 %v224_v7 }
  0x1b   :  { %210 = vmatprep.subr.bf16.mxu0 %v227_v0 }
  0x1e   :  { %211 = vmatpush3.bf16.msra.mxu0 %v225_v8 }
  0x21   :  { %213 = vmatmul.mubr.bf16.vlgmr.msra.gmra.mrb[0].mxu0 %v226_v9 }
  0xf4   :  { %v136_v11 = vpop.f32.mrb[0].mxu0 }
  0xf5   :  { %v143_v12 = vadd.f32 %v168_v10, %v136_v11  ;;  %v214_v13 = vpop.f32.mrb[1].mxu0 }
  0xf6   :  { %v139_v14 = vpop.f32.mrb[2].mxu0 }
  0xf7   :  { %v144_v15 = vadd.f32 %v168_v10, %v139_v14  ;;  %v215_v16 = vpop.f32.mrb[3].mxu0  ;;  %v152_v17 = vmax.f32 %v143_v12, 0.0 }
  0xf9   :  { %v153_v18 = vmax.f32 %v144_v15, 0.0 }
  0xfb   :  { %v185_v19 = vpack.c.bf16 %v153_v18, %v152_v17 }
  0xfd   :  { %186 = vst [vmem:[%s285_s3] sm:$0xff] %v185_v19  }

</bundles_post_ra>
